<compile_context>
chip_gen: v7x
topology: tpu7x:2x2x1
jax: 0.10.0
libtpu: 0.0.40
codegen_flags: <defaults>
</compile_context>

<pallas_src>
import jax
import jax.numpy as jnp
import numpy as np
from jax.experimental import pallas as pl
from jax.experimental.pallas import tpu as pltpu

BN_EPS = 1e-5  # PyTorch BatchNorm2d default eps


def offset_block_kernel(x_ref, w_ref, b_ref, o_ref):
    # x_ref: [Cin, thw] (streamed, bf16 by default)
    # w_ref: [tco, Cin] (resident folded weight, bf16 by default)
    # b_ref: [tco, 1]   (f32 folded bias + BN shift)
    # o_ref: [tco, thw] (f32 output)
    # Single fused GEMM (folded pre/post/downsample convs) on the MXU with f32
    # accumulation; bias/BN affine + ReLU in f32 after the MXU.
    y = jnp.dot(w_ref[...], x_ref[...], preferred_element_type=jnp.float32)
    o_ref[...] = jnp.maximum(y + b_ref[...], 0.0).astype(o_ref.dtype)


def _vmem_budget_bytes():
    """Budget for the double-buffered streamed tiles (input + output)."""
    try:
        cap = int(pltpu.get_tpu_info().vmem_capacity_bytes)
    except Exception:
        cap = 64 << 20  # conservative fallback: v7x per-TensorCore VMEM
    # Leave most of VMEM for weights / compiler scratch / other buffering.
    return min(cap // 4, 12 << 20)


def prepare_offset_block_params(params, compute_dtype=jnp.bfloat16):
    """One-time fold of pre/post/downsample 1x1 convs + eval-mode BN.

    Returns (w_k [Cout, Cin] in compute_dtype, b_k [Cout, 1] in f32).
    Hoisted out of the forward so the fold is not re-emitted per call.
    """
    w_fused = jnp.dot(params["w_pre"], params["w_post"]) + params["w_down"]   # [Cin, Cout]
    b_fused = jnp.dot(params["b_pre"], params["w_post"]) + params["b_post"]   # [1, Cout]
    scale = params["gamma"] * jax.lax.rsqrt(params["var"] + BN_EPS)           # [1, Cout]
    shift = params["beta"] - params["mean"] * scale                           # [1, Cout]
    w_k = jnp.transpose(w_fused * scale).astype(compute_dtype)                # [Cout, Cin]
    b_k = jnp.transpose(b_fused * scale + shift).astype(jnp.float32)          # [Cout, 1]
    return w_k, b_k


def offset_block_forward(x_nchw, w_k, b_k, *, out_dtype=jnp.float32):
    N, Cin, H, W = x_nchw.shape
    Cout = w_k.shape[0]
    compute_dtype = w_k.dtype
    HW = H * W

    # ---- VMEM-budget-driven spatial tile (always a multiple of 128 lanes) ----
    in_bytes = jnp.dtype(compute_dtype).itemsize
    out_bytes = jnp.dtype(out_dtype).itemsize
    bytes_per_pixel = 2 * (Cin * in_bytes + Cout * out_bytes)  # double-buffered x + out tiles
    budget = _vmem_budget_bytes()
    hw128 = -(-HW // 128) * 128
    thw = max(128, (budget // bytes_per_pixel) // 128 * 128)
    thw = min(thw, hw128)
    n_hw = -(-HW // thw)          # ceil-div
    hw_pad = n_hw * thw           # pad spatial axis so every tile is whole & lane-dense

    # ---- optional Cout split so v7x's 2 TensorCores both get work on tiny inputs ----
    n_co, tco = 1, Cout
    if N * n_hw < 2 and Cout % 16 == 0:
        n_co, tco = 2, Cout // 2

    # ---- stream x in NCHW (last dim = flattened spatial, lane-dense), bf16 ----
    x3 = x_nchw.reshape(N, Cin, HW).astype(compute_dtype)  # contiguous view, no transpose
    if hw_pad != HW:
        x3 = jnp.pad(x3, ((0, 0), (0, 0), (0, hw_pad - HW)))

    out3 = pl.pallas_call(
        offset_block_kernel,
        out_shape=jax.ShapeDtypeStruct((N, Cout, hw_pad), out_dtype),
        grid_spec=pltpu.PrefetchScalarGridSpec(
            num_scalar_prefetch=0,
            grid=(N, n_co, n_hw),
            in_specs=[
                pl.BlockSpec((None, Cin, thw), lambda n, c, t: (n, 0, t)),  # x tile
                pl.BlockSpec((tco, Cin), lambda n, c, t: (c, 0)),           # folded weight
                pl.BlockSpec((tco, 1), lambda n, c, t: (c, 0)),             # folded bias/BN
            ],
            out_specs=pl.BlockSpec((None, tco, thw), lambda n, c, t: (n, c, t)),
        ),
        compiler_params=pltpu.CompilerParams(
            dimension_semantics=("parallel", "parallel", "parallel"),
            vmem_limit_bytes=32 << 20,  # explicit: above v5e's 16 MiB scoped default
        ),
    )(x3, w_k, b_k)

    if hw_pad != HW:
        out3 = out3[:, :, :HW]
    return out3.reshape(N, Cout, H, W)  # already NCHW


def offset_block_reference(x_nchw, params):
    """Unfused pure-JAX f32 reference matching the PyTorch module semantics."""
    N, Cin, H, W = x_nchw.shape
    Cout = params["w_post"].shape[1]
    x2d = jnp.transpose(x_nchw, (0, 2, 3, 1)).reshape(N * H * W, Cin)
    pre = x2d @ params["w_pre"] + params["b_pre"]
    dis = pre  # DisplaceChannel with disable_displace=True is identity
    post = dis @ params["w_post"] + params["b_post"]
    skip = x2d @ params["w_down"]
    s = skip + post
    bn = ((s - params["mean"]) / jnp.sqrt(params["var"] + BN_EPS)
          * params["gamma"] + params["beta"])
    out2d = jnp.maximum(bn, 0.0)
    return jnp.transpose(out2d.reshape(N, H, W, Cout), (0, 3, 1, 2))


def make_params(key, inplanes, displace_planes, outplanes):
    ks = jax.random.split(key, 9)
    f32 = jnp.float32
    # 1x1 conv weights stored as [Cin, Cout] (transposed PyTorch [Cout, Cin, 1, 1])
    return {
        "w_pre": (jax.random.normal(ks[0], (inplanes, displace_planes)) * 0.05).astype(f32),
        "b_pre": (jax.random.normal(ks[1], (1, displace_planes)) * 0.05).astype(f32),
        "w_post": (jax.random.normal(ks[2], (displace_planes, outplanes)) * 0.05).astype(f32),
        "b_post": (jax.random.normal(ks[3], (1, outplanes)) * 0.05).astype(f32),
        "w_down": (jax.random.normal(ks[4], (inplanes, outplanes)) * 0.05).astype(f32),
        "gamma": (1.0 + 0.1 * jax.random.normal(ks[5], (1, outplanes))).astype(f32),
        "beta": (0.1 * jax.random.normal(ks[6], (1, outplanes))).astype(f32),
        "mean": (0.1 * jax.random.normal(ks[7], (1, outplanes))).astype(f32),
        "var": (0.5 + jnp.abs(jax.random.normal(ks[8], (1, outplanes)))).astype(f32),
    }


if __name__ == "__main__":
    N, H, W = 2, 16, 16
    inplanes, displace_planes, outplanes = 16, 32, 32

    key = jax.random.PRNGKey(0)
    kx, kp = jax.random.split(key)
    x = jax.random.normal(kx, (N, inplanes, H, W), dtype=jnp.float32)
    params = make_params(kp, inplanes, displace_planes, outplanes)
    ref = offset_block_reference(x, params)

    # f32-streaming path: bitwise-level check against the unfused reference.
    w32, b32 = prepare_offset_block_params(params, compute_dtype=jnp.float32)
    out32 = jax.block_until_ready(offset_block_forward(x, w32, b32))
    np.testing.assert_allclose(np.asarray(out32), np.asarray(ref), rtol=1e-5, atol=5e-5)

    # Default bf16-streaming path (the bandwidth-bound production configuration).
    wbf, bbf = prepare_offset_block_params(params)  # bf16 weights by default
    outbf = jax.block_until_ready(offset_block_forward(x, wbf, bbf))
    np.testing.assert_allclose(np.asarray(outbf), np.asarray(ref), rtol=3e-2, atol=3e-2)

    assert out32.shape == (N, outplanes, H, W)
    assert outbf.shape == (N, outplanes, H, W)
    print("KERNEL_OK")
</pallas_src>

<mosaic_0001>
module attributes {stable_mosaic.version = 11 : i64} {
  func.func @offset_block_kernel(%arg0: i32, %arg1: i32, %arg2: i32, %arg3: memref<1x16x256xf32, #tpu.memory_space<vmem>>, %arg4: memref<32x16xf32, #tpu.memory_space<vmem>>, %arg5: memref<32x1xf32, #tpu.memory_space<vmem>>, %arg6: memref<1x32x256xf32, #tpu.memory_space<vmem>>) attributes {dimension_semantics = [#tpu.dimension_semantics<parallel>, #tpu.dimension_semantics<parallel>, #tpu.dimension_semantics<parallel>], iteration_bounds = array<i64: 2, 1, 1>, scalar_prefetch = 0 : i64, scratch_operands = 0 : i64, tpu.core_type = #tpu.core_type<tc>, window_params = [{transform_indices = @transform_0, window_bounds = array<i64: 1, 16, 256>}, {transform_indices = @transform_1, window_bounds = array<i64: 32, 16>}, {transform_indices = @transform_2, window_bounds = array<i64: 32, 1>}, {transform_indices = @transform_3, window_bounds = array<i64: 1, 32, 256>}]} {
    %c0 = arith.constant 0 : index
    %c0_0 = arith.constant 0 : index
    %0 = vector.load %arg4[%c0, %c0_0] : memref<32x16xf32, #tpu.memory_space<vmem>>, vector<32x16xf32>
    %c0_1 = arith.constant 0 : index
    %c0_2 = arith.constant 0 : index
    %c0_3 = arith.constant 0 : index
    %1 = vector.load %arg3[%c0_1, %c0_2, %c0_3] : memref<1x16x256xf32, #tpu.memory_space<vmem>>, vector<1x16x256xf32>
    %2 = vector.shape_cast %1 : vector<1x16x256xf32> to vector<16x256xf32>
    %cst = arith.constant dense<0.000000e+00> : vector<32x256xf32>
    %3 = tpu.matmul %0, %2, %cst {dimension_numbers = #tpu.dot_dimension_numbers<[1], [0], [0], [1], [0, 0, 1, 1], [], []>} : vector<32x16xf32>, vector<16x256xf32>, vector<32x256xf32> -> vector<32x256xf32>
    %c0_4 = arith.constant 0 : index
    %c0_5 = arith.constant 0 : index
    %4 = vector.load %arg5[%c0_4, %c0_5] : memref<32x1xf32, #tpu.memory_space<vmem>>, vector<32x1xf32>
    %5 = vector.broadcast %4 : vector<32x1xf32> to vector<32x256xf32>
    %6 = arith.addf %3, %5 : vector<32x256xf32>
    %cst_6 = arith.constant 0.000000e+00 : f32
    %7 = vector.broadcast %cst_6 : f32 to vector<32x256xf32>
    %8 = arith.maximumf %6, %7 : vector<32x256xf32>
    %c0_7 = arith.constant 0 : index
    %c0_8 = arith.constant 0 : index
    %c0_9 = arith.constant 0 : index
    %9 = vector.load %arg6[%c0_7, %c0_8, %c0_9] : memref<1x32x256xf32, #tpu.memory_space<vmem>>, vector<1x32x256xf32>
    %10 = vector.shape_cast %9 : vector<1x32x256xf32> to vector<32x256xf32>
    %11 = vector.shape_cast %8 : vector<32x256xf32> to vector<1x32x256xf32>
    tpu.vector_store %arg6[%c0_7, %c0_8, %c0_9], %11 {strides = array<i32>} : memref<1x32x256xf32, #tpu.memory_space<vmem>>, vector<1x32x256xf32>,
    return
  }
  func.func @transform_0(%arg0: i32, %arg1: i32, %arg2: i32) -> (i32, i32, i32) {
    %c0_i32 = arith.constant 0 : i32
    %c0_i32_0 = arith.constant 0 : i32
    return %arg0, %c0_i32, %arg2 : i32, i32, i32
  }
  func.func @transform_1(%arg0: i32, %arg1: i32, %arg2: i32) -> (i32, i32) {
    %c0_i32 = arith.constant 0 : i32
    %c0_i32_0 = arith.constant 0 : i32
    return %arg1, %c0_i32 : i32, i32
  }
  func.func @transform_2(%arg0: i32, %arg1: i32, %arg2: i32) -> (i32, i32) {
    %c0_i32 = arith.constant 0 : i32
    %c0_i32_0 = arith.constant 0 : i32
    return %arg1, %c0_i32 : i32, i32
  }
  func.func @transform_3(%arg0: i32, %arg1: i32, %arg2: i32) -> (i32, i32, i32) {
    %c0_i32 = arith.constant 0 : i32
    return %arg0, %arg1, %arg2 : i32, i32, i32
  }
}

</mosaic_0001>

<bundles_post_ra>
// kernel: tpu_custom_call.1
= control target key start
LH: loop header
LB: loop body
LE: loop exit
PB: predicated region body
PF: predicated region fallthrough
CT: control target
= control target key end

     0   :  { %8 = vsyncpa [#allocation3], 0  ;;  %s873_s0 = inlined_call_operand.vmem [shape: f32[2,16,256], index: 0, kind: input, shape index: {}]   ;;  %s874_s1 = inlined_call_operand.vmem [shape: f32[32,16], index: 1, kind: input, shape index: {}]   ;;  %s875_s2 = inlined_call_operand.vmem [shape: f32[32,1], index: 2, kind: input, shape index: {}]   ;;  %s876_s3 = inlined_call_operand.hbm [shape: f32[2,32,256], index: 3, kind: output, shape index: {}]  }
   0x1   :  { %10 = vsyncpa [#allocation3 + $0x1], 0  ;;  %s730_s12 = smov 0   ;;  %s732_s13 = smov 0  }
   0x2   :  { %s734_s14 = smov 0   ;;  %s736_s15 = smov 0  }
   0x3   :  { %s738_s16 = smov 0   ;;  %s740_s17 = smov 0  }
   0x4 LB: > { %s537_s18 = sadd.s32 4294967295, %s703_s17   ;;  %s538_s19 = sadd.s32 4294967294, %s703_s17   ;;  %s703_s17 = sphi %s740_s17, %s16_s17   ;;  %s699_s16 = sphi %s738_s16, %s883_s16   ;;  %s695_s15 = sphi %s736_s15, %s882_s15   ;;  %s691_s14 = sphi %s734_s14, %s881_s14   ;;  %s687_s13 = sphi %s732_s13, %s880_s13   ;;  %s683_s12 = sphi %s730_s12, %s879_s12  }
   0x5   : > { %s35_s20 = sadd.s32 1, %s699_s16  ;;  %s126_s21 = sadd.s32 1, %s691_s14 }
   0x6   : > { %p37_p0 = scmp.ge.s32.totalorder %s35_s20, 2  ;;  %p136_p1 = scmp.ne.s32.totalorder %s691_s14, %s687_s13 }
   0x7   : > { %p137_p2 = scmp.eq.s32.totalorder %s537_s18, 1  ;;  %p142_p3 = scmp.ne.s32.totalorder %s687_s13, %s683_s12 }
   0x8   : > { %s885_s20 = smov (%p37_p0, %s35_s20), 0  ;;  %p143_p5 = scmp.eq.s32.totalorder %s538_s19, 1 }
   0x9   : > { %p770_p4 = por %p137_p2, %p136_p1  ;;  %s119_s23 = ssub.s32 %s699_s16, %s885_s20 }
   0xa   : > { %p543_p6 = scmp.ge.s32.totalorder %s703_s17, 1  ;;  %p124_p7 = scmp.eq.s32.totalorder %s119_s23, 0 }
   0xb   : > { %p777_p8 = por %p143_p5, %p142_p3  ;;  %p192_p9 = scmp.lt.s32.totalorder %s703_s17, 3 }
   0xc   : > { %s783_s25 = scalar_select %p124_p7, %s691_s14, %s126_s21  }
   0xd   : > { %p193_p10 = pnand %p543_p6, %p192_p9 }
   0xe   : > { %p231_p11 = scmp.lt.s32.totalorder (!%p193_p10), %s695_s15, 1  ;;  %v705_v0 = vmov (!%p193_p10), 0.0   ;;  %v264_v1 = vld [vmem:[%s875_s2 + $0x10] sm:$0xff] (!%p193_p10)  ;;  %v262_v2 = vld [vmem:[%s875_s2] sm:$0xff] (!%p193_p10)  ;;  %v706_v3 = vmov (!%p193_p10), 0   ;;  %v265_v4 = vld [vmem:[%s875_s2 + $0x18] sm:$0xff] (!%p193_p10) }
   0xf   : > { %196 = sbr.rel (%p193_p10) target bundleno = 269 (0x10d), region = 32  ;;  %363 = vmatprep.mubr.f32.mxu0 (!%p193_p10), %v705_v0  ;;  %375 = vmatprep.mubr.f32.mxu1 (!%p193_p10), %v705_v0  ;;  %v263_v5 = vld [vmem:[%s875_s2 + $0x8] sm:$0xff] (!%p193_p10)  ;;  %v254_v12 = vld [vmem:[%s874_s1] sm:$0xff] (!%p193_p10)  ;;  %vm286_vm0 = vcmask (!%p193_p10), 130048   ;;  %v256_v13 = vld [vmem:[%s874_s1 + $0x10] sm:$0xff] (!%p193_p10)  ;;  %s557_s5 = sshll.u32 (!%p193_p10), %s695_s15, 10 }
  0x10   : > { %624 = vset.pattern.permute.xlu1 (!%p193_p10), %v706_v3  ;;  %623 = vset.pattern.permute.xlu0 (!%p193_p10), %v706_v3  ;;  %v255_v14 = vld [vmem:[%s874_s1 + $0x8] sm:$0xff] (!%p193_p10)  ;;  %v257_v15 = vld [vmem:[%s874_s1 + $0x18] sm:$0xff] (!%p193_p10)  ;;  %s707_s18 = smov (!%p193_p10), [#allocation2]  }
  0x11   : > { %278 = vperm.xlu1 (!%p193_p10), %624, %v264_v1   ;;  %268 = vperm.xlu0 (!%p193_p10), %623, %v262_v2   ;;  %s629_s19 = sshll.u32 (!%p193_p10), %s707_s18, 4  ;;  %s630_s19 = int_to_ptr.vmem [resolvable:$false] %s629_s19 }
  0x12   : > { %s631_s21 = scalar_lea.vmem (!%p193_p10), %s630_s19, 2048 }
  0x15   : > { %283 = vperm.xlu1 (!%p193_p10), %624, %v265_v4   ;;  %273 = vperm.xlu0 (!%p193_p10), %623, %v263_v5  }
  0x16   : > { %s232_s30 = scalar_select %p231_p11, %s695_s15, 1 }
  0x17   : > { %s821_s15 = scalar_lea.hbm %s876_s3, %s557_s5 }
  0x18   : > { %s556_s4 = sshll.u32 %s232_s30, 5  ;;  %s227_s30 = sand.u32 1, %s687_s13  }
  0x19   : > { %s238_s11 = scalar_lea.vmem %s873_s0, %s556_s4  ;;  %s544_s4 = sshll.u32 %s227_s30, 6 }
  0x1a   : > { %v259_v6 = vld [vmem:[%s238_s11 + $0x8] sm:$0xff]  ;;  %v261_v7 = vld [vmem:[%s238_s11 + $0x18] sm:$0xff]  ;;  %v258_v8 = vld [vmem:[%s238_s11] sm:$0xff]  ;;  %s229_s6 = scalar_lea.vmem [#allocation2], %s544_s4  ;;  %s827_s10 = scalar_lea.sflag [#allocation3], %s227_s30 }
  0x1b   : > { %v558_v9 = vpack.c.bf16 %v261_v7, %v259_v6  ;;  %v260_v10 = vld [vmem:[%s238_s11 + $0x10] sm:$0xff]  ;;  %s423_s7 = sshll.u32 %s229_s6, 4  ;;  %s823_s7 = int_to_ptr.vmem [resolvable:$true] %s423_s7 }
  0x1c   : > { %v560_v11 = vpack.c.bf16 %v260_v10, %v258_v8  ;;  %s625_s11 = scalar_lea.vmem %s823_s7, 1024  ;;  %p632_p1 = scmp.lt.s32.totalorder %s823_s7, %s630_s19 }
  0x1d   : > { %559 = vmatprep.subr.bf16.mxu0 %v558_v9  ;;  %562 = vmatprep.subr.bf16.mxu1 %v558_v9  ;;  %p626_p12 = scmp.ne.s32.totalorder %s823_s7, %s625_s11  ;;  %p633_p2 = scmp.lt.s32.totalorder %s631_s21, %s625_s11 }
  0x1e   : > { %561 = vmatpush1.bf16.msra.mxu0 %v560_v11  ;;  %563 = vmatpush1.bf16.msra.mxu1 %v560_v11 }
  0x1f   : > { %p627_p13 = pnand %p626_p12, %p770_p4  ;;  %p634_p3 = por %p633_p2, %p632_p1 }
  0x21   : > { %547 = vmatmul.mubr.msk.f32.vlgmr.msra.gmra.mrb[0].mxu0 %vm286_vm0, %v254_v12  ;;  %549 = vmatmul.mubr.msk.f32.vlgmr.msra.gmra.mrb[0].mxu1 %vm286_vm0, %v256_v13  ;;  %p628_p0 = pneg %p627_p13 }
  0x22   : > { %369 = vmatprep.mubr.f32.mxu0 %v705_v0  ;;  %381 = vmatprep.mubr.f32.mxu1 %v705_v0 }
  0x23   : > { %p635_p5 = pnand %p634_p3, %p628_p0 }
  0x25   : > { %548 = vmatmul.mubr.msk.f32.gmra.mrb[2].mxu0 %vm286_vm0, %v255_v14  ;;  %550 = vmatmul.mubr.msk.f32.gmra.mrb[2].mxu1 %vm286_vm0, %v257_v15 }
  0x90   : > { %v279_v16 = vpop.permute.xlu1 %278  ;;  %v269_v17 = vpop.permute.xlu0 %268 }
  0x94   : > { %v284_v28 = vpop.permute.xlu1 %283  ;;  %v274_v29 = vpop.permute.xlu0 %273 }
  0xf4   : > { %v365_v18 = vpop.f32.mrb[0].mxu0  ;;  %v377_v19 = vpop.f32.mrb[0].mxu1 }
  0xf5   : > { %v366_v20 = vadd.f32 %v365_v18, %v269_v17  ;;  %v378_v21 = vadd.f32 %v377_v19, %v279_v16  ;;  %v367_v22 = vpop.f32.mrb[1].mxu0  ;;  %v379_v23 = vpop.f32.mrb[1].mxu1 }
  0xf6   : > { %v368_v24 = vadd.f32 %v367_v22, %v269_v17  ;;  %v380_v25 = vadd.f32 %v379_v23, %v279_v16 }
  0xf7   : > { %v388_v26 = vmax.f32 %v366_v20, 0.0  ;;  %v392_v27 = vmax.f32 %v378_v21, 0.0 }
  0xf8   : > { %v389_v30 = vmax.f32 %v368_v24, 0.0  ;;  %v393_v31 = vmax.f32 %v380_v25, 0.0  ;;  %v371_v32 = vpop.f32.mrb[2].mxu0  ;;  %v383_v33 = vpop.f32.mrb[2].mxu1 }
  0xf9   : > { %396 = vst [vmem:[%s229_s6] sm:$0xff] %v388_v26  ;;  %400 = vst [vmem:[%s229_s6 + $0x20] sm:$0xff] %v392_v27  ;;  %v372_v34 = vadd.f32 %v371_v32, %v274_v29  ;;  %v384_v35 = vadd.f32 %v383_v33, %v284_v28  ;;  %v373_v36 = vpop.f32.mrb[3].mxu0  ;;  %v385_v37 = vpop.f32.mrb[3].mxu1 }
  0xfa   : > { %397 = vst [vmem:[%s229_s6 + $0x8] sm:$0xff] %v389_v30  ;;  %401 = vst [vmem:[%s229_s6 + $0x28] sm:$0xff] %v393_v31  ;;  %v374_v38 = vadd.f32 %v373_v36, %v274_v29  ;;  %v386_v39 = vadd.f32 %v385_v37, %v284_v28 }
  0xfb   : > { %v390_v40 = vmax.f32 %v372_v34, 0.0  ;;  %v394_v41 = vmax.f32 %v384_v35, 0.0 }
  0xfc   : > { %v391_v42 = vmax.f32 %v374_v38, 0.0  ;;  %v395_v43 = vmax.f32 %v386_v39, 0.0 }
  0xfd   : > { %398 = vst [vmem:[%s229_s6 + $0x10] sm:$0xff] %v390_v40  ;;  %402 = vst [vmem:[%s229_s6 + $0x30] sm:$0xff] %v394_v41 }
  0xfe   : > { %399 = vst [vmem:[%s229_s6 + $0x18] sm:$0xff] %v391_v42  ;;  %403 = vst [vmem:[%s229_s6 + $0x38] sm:$0xff] %v395_v43 }
  0xff   : > { %638 = shalt.err (!%p635_p5)
}
 0x100   : > { %s639_s23 = scalar_lea.hbm %s821_s15, 1024  ;;  %s643_s28 = scalar_lea.hbm %s876_s3, 2048 }
 0x101   : > { %p640_p6 = scmp.ne.s32.totalorder %s821_s15, %s639_s23  ;;  %p644_p10 = scmp.lt.u32.totalorder %s821_s15, %s876_s3 }
 0x102   : > { %p645_p11 = scmp.lt.u32.totalorder %s643_s28, %s639_s23  ;;  %p647_p13 = scmp.lt.u32.totalorder %s639_s23, %s821_s15 }
 0x103   : > { %p641_p7 = pnand %p640_p6, %p770_p4 }
 0x104   : > { %p646_p12 = por %p645_p11, %p644_p10 }
 0x105   : > { %p642_p9 = pneg %p641_p7 }
 0x106   : > { %p648_p0 = por %p647_p13, %p646_p12 }
 0x108   : > { %p649_p1 = pnand %p648_p0, %p642_p9 }
 0x10a   : > { %652 = shalt.err (!%p649_p1)
}
 0x10b   : > { %s708_s4 = smov 256   ;;  %s709_s5 = smov 16  }
 0x10c   : > { %564 = dma.vmem_to_hbm [thread:$0]  (%p770_p4), %s823_s7, 1024, %s821_s15, %s827_s10, %s708_s4, %s708_s4, %s709_s5  }
 0x10d PF: > { %p570_p2 = scmp.ge.s32.totalorder %s703_s17, 2  ;;  %s438_s6 = sand.u32 1, %s683_s12  }
 0x10e   : > { %s439_s8 = scalar_lea.sflag [#allocation3], %s438_s6 }
 0x10f   : > { %p567_p3 = pnand %p570_p2, %p777_p8 }
 0x111   : > { %678 = dma.done.wait (!%p567_p3), %s439_s8, 1024  }
 0x112   : > { %680 = vsyncadd (!%p567_p3), %s439_s8, 4294966272  ;;  %s16_s17 = sadd.s32 1, %s703_s17   ;;  %s879_s12 = smov %s687_s13 }
 0x113   : > { %p13_p5 = scmp.ge.s32.totalorder %s16_s17, 4   ;;  %s880_s13 = smov %s691_s14 }
 0x114   : > { %s881_s14 = smov %s783_s25  ;;  %s882_s15 = smov %s699_s16 }
 0x115   : > { %s883_s16 = smov %s885_s20  ;;  %15 = sbr.rel (!%p13_p5) target bundleno = 4 (0x4), region = 73 }
 0x11c   :  { %444 = vsyncpa [#allocation3], 1 }
 0x11d   :  { %446 = vsyncpa [#allocation3 + $0x1], 1 }

</bundles_post_ra>
